<compile_context>
chip_gen: v5e
topology: v5e:2x2
jax: 0.10.0
libtpu: 0.0.40
codegen_flags: <defaults>
</compile_context>

<pallas_src>
import math

import jax
import jax.numpy as jnp
from jax.experimental import pallas as pl
from jax.experimental.pallas import tpu as pltpu


_BLOCK_BUDGET_BYTES = 6 << 20  # target output-block size (HBM-writeback bound)


def _wan_rope_kernel(wf_ref, sp_ref, out_ref):
    # wf_ref : (n_f, fb, C) resident per-frame rows (frame cols set, 0 elsewhere)
    # sp_ref : (Rb, C)      spatial (h, w) slab tile for this grid row
    # out_ref: (fb, Rb, C)
    i = pl.program_id(1)                      # frame-block index (inner axis)
    wf = wf_ref[i]                            # (fb, C)
    sp = sp_ref[...]                          # (Rb, C)
    out_ref[...] = (sp[None, :, :] + wf[:, None, :]).astype(out_ref.dtype)


def _choose_tiles(ppf, R, C, itemsize, budget_bytes):
    """Pick (fb, Rb): frames per block and spatial rows per block.

    fb divides ppf; Rb divides R and is a multiple of 8 (or equals R) so the
    (8, 128) BlockSpec rule holds.  Prefers the largest block under the byte
    budget while keeping >= 2 grid blocks (even count when possible) so both
    v7x TensorCores get work.
    """
    frame_bytes = R * C * itemsize
    r_cands = [r for r in range(1, R + 1) if R % r == 0 and (r % 8 == 0 or r == R)]

    if frame_bytes > budget_bytes:
        # A single frame's slab exceeds the budget: fb = 1, tile spatial rows.
        fit = [r for r in r_cands if r < R and r * C * itemsize <= budget_bytes]
        Rb = max(fit) if fit else min(r_cands)
        return 1, Rb

    # Whole-frame (or multi-frame) blocks fit: group frames under the budget.
    best_key, best_fb = None, 1
    for fb in range(1, ppf + 1):
        if ppf % fb or fb * frame_bytes > budget_bytes:
            continue
        n = ppf // fb
        key = (n >= 2, n % 2 == 0 and n >= 2, fb)   # >=2 blocks > even > large
        if best_key is None or key > best_key:
            best_key, best_fb = key, fb
    fb = best_fb
    Rb = R
    if ppf // fb == 1:
        # Only one frame block in total (ppf == 1): split spatial rows so there
        # are still >= 2 parallel grid blocks.
        halves = [r for r in r_cands if r < R]
        if halves:
            Rb = max(halves)
    return fb, Rb


def wan_rotary_pos_embed(hidden_states, freqs, attention_head_dim, patch_size,
                         max_seq_len):
    del max_seq_len  # only bounds the freq table; slicing below handles it
    _, _, f, h, w = hidden_states.shape
    p_t, p_h, p_w = patch_size
    ppf, pph, ppw = f // p_t, h // p_h, w // p_w

    d_small = attention_head_dim // 6
    d = attention_head_dim // 2
    d0 = d - 2 * d_small
    dtype = freqs.dtype

    # TODO(synk): production Wan builds this table in float64/complex; this
    # kernel assumes the real-valued fp32 layout with split sizes (d0, d/6, d/6).
    freq0 = freqs[:ppf, :d0]
    freq1 = freqs[:pph, d0:d0 + d_small]
    freq2 = freqs[:ppw, d0 + d_small:d]

    s_block = pph * ppw
    seq = ppf * s_block

    # Grid-invariant spatial slab (computed once in XLA), rows ordered (h, w):
    #   cols [0, d0)          -> 0          (frame part added in-kernel)
    #   cols [d0, d0+d_small) -> freq1[h]
    #   cols [d0+d_small, d)  -> freq2[w]
    sp = jnp.concatenate([
        jnp.zeros((pph, ppw, d0), dtype),
        jnp.broadcast_to(freq1[:, None, :], (pph, ppw, d_small)),
        jnp.broadcast_to(freq2[None, :, :], (pph, ppw, d_small)),
    ], axis=-1).reshape(s_block, d)

    # Per-frame row: frame columns populated, spatial columns zero.
    wf = jnp.concatenate([freq0, jnp.zeros((ppf, d - d0), dtype)], axis=-1)

    # Lane-dense packing (generalized): fold g = 128/gcd(128, d) consecutive
    # (h, w) rows into one C = lcm(128, d)-lane row whenever s_block % g == 0 so
    # stores are unmasked full-lane vst.  Pads are true zeros -> sum is exact.
    g = 128 // math.gcd(128, d)
    if s_block % g == 0:
        C = g * d
        R = s_block // g
        sp_in = sp.reshape(R, C)
        wf_in = jnp.tile(wf, (1, g)) if g > 1 else wf   # col c -> wf[:, c % d]
    else:
        # Fallback keeps last two block dims == full array dims (masked stores).
        C = d
        R = s_block
        sp_in = sp
        wf_in = wf

    itemsize = jnp.dtype(dtype).itemsize
    fb, Rb = _choose_tiles(ppf, R, C, itemsize, _BLOCK_BUDGET_BYTES)
    n_f = ppf // fb
    n_r = R // Rb
    wf_in = wf_in.reshape(n_f, fb, C)

    # Explicit scoped-VMEM limit: double-buffered output block + (conservatively
    # double-buffered) spatial tile + resident wf table, plus headroom.  Safe on
    # v5e (16 MiB default scoped) and below v7x's 64 MiB physical VMEM.
    out_block_bytes = fb * Rb * C * itemsize
    vmem_needed = (2 * out_block_bytes + 2 * Rb * C * itemsize
                   + 2 * ppf * C * itemsize)
    vmem_limit = int(min(max(vmem_needed + (4 << 20), 16 << 20), 48 << 20))

    out3 = pl.pallas_call(
        _wan_rope_kernel,
        out_shape=jax.ShapeDtypeStruct((ppf, R, C), dtype),
        grid=(n_r, n_f),   # frame axis innermost -> spatial tile stays resident
        in_specs=[
            # Full per-frame table, constant index map -> DMA'd once.
            pl.BlockSpec((n_f, fb, C), lambda j, i: (0, 0, 0)),
            # Spatial slab tile; block index constant across the inner loop.
            pl.BlockSpec((Rb, C), lambda j, i: (j, 0)),
        ],
        out_specs=pl.BlockSpec((fb, Rb, C), lambda j, i: (i, j, 0)),
        compiler_params=pltpu.CompilerParams(
            dimension_semantics=("parallel", "parallel"),
            vmem_limit_bytes=vmem_limit),
    )(wf_in, sp_in)

    # (ppf, R, C) is a contiguous row-major view of (seq, d) -> free reshape.
    return out3.reshape(1, 1, seq, d)


def _reference(hidden_states, freqs, attention_head_dim, patch_size):
    # Pure-JAX transcription of the PyTorch forward for verification.
    _, _, f, h, w = hidden_states.shape
    p_t, p_h, p_w = patch_size
    ppf, pph, ppw = f // p_t, h // p_h, w // p_w
    d_small = attention_head_dim // 6
    d0 = attention_head_dim // 2 - 2 * d_small
    freq0 = freqs[:, :d0]
    freq1 = freqs[:, d0:d0 + d_small]
    freq2 = freqs[:, d0 + d_small:d0 + 2 * d_small]
    ff = jnp.broadcast_to(freq0[:ppf].reshape(ppf, 1, 1, -1), (ppf, pph, ppw, d0))
    fh = jnp.broadcast_to(freq1[:pph].reshape(1, pph, 1, -1), (ppf, pph, ppw, d_small))
    fw = jnp.broadcast_to(freq2[:ppw].reshape(1, 1, ppw, -1), (ppf, pph, ppw, d_small))
    out = jnp.concatenate([ff, fh, fw], axis=-1)
    return out.reshape(1, 1, ppf * pph * ppw, -1)


if __name__ == "__main__":
    key = jax.random.PRNGKey(0)
    k_hs, k_fr = jax.random.split(key)

    attention_head_dim = 32          # head_dim//2 = 16 = 6 + 5 + 5
    patch_size = (1, 2, 2)
    max_seq_len = 16

    # Deterministic real-valued stand-in for the Wan RoPE table.
    freqs = jax.random.uniform(k_fr, (max_seq_len, attention_head_dim // 2),
                               dtype=jnp.float32)

    # Case 1: lane-dense packed path, multi-frame blocks (frame-axis tiling).
    hs1 = jax.random.normal(k_hs, (2, 4, 4, 8, 8), dtype=jnp.float32)
    out1 = jax.block_until_ready(
        wan_rotary_pos_embed(hs1, freqs, attention_head_dim, patch_size,
                             max_seq_len))
    ref1 = _reference(hs1, freqs, attention_head_dim, patch_size)
    assert out1.shape == ref1.shape == (1, 1, 64, attention_head_dim // 2), out1.shape
    assert out1.dtype == ref1.dtype == jnp.float32
    assert jnp.allclose(out1, ref1, atol=1e-6, rtol=1e-6), "case1 mismatch"

    # Case 2: fallback path (pph*ppw = 9, not packable / not a multiple of 8).
    hs2 = jax.random.normal(k_hs, (1, 4, 2, 6, 6), dtype=jnp.float32)
    out2 = jax.block_until_ready(
        wan_rotary_pos_embed(hs2, freqs, attention_head_dim, patch_size,
                             max_seq_len))
    ref2 = _reference(hs2, freqs, attention_head_dim, patch_size)
    assert out2.shape == ref2.shape == (1, 1, 18, attention_head_dim // 2), out2.shape
    assert jnp.allclose(out2, ref2, atol=1e-6, rtol=1e-6), "case2 mismatch"

    # Case 3: ppf == 1 -> spatial-row tiling still gives >= 2 parallel blocks.
    hs3 = jax.random.normal(k_hs, (1, 4, 1, 32, 32), dtype=jnp.float32)
    out3 = jax.block_until_ready(
        wan_rotary_pos_embed(hs3, freqs, attention_head_dim, patch_size,
                             max_seq_len))
    ref3 = _reference(hs3, freqs, attention_head_dim, patch_size)
    assert out3.shape == ref3.shape == (1, 1, 256, attention_head_dim // 2), out3.shape
    assert jnp.allclose(out3, ref3, atol=1e-6, rtol=1e-6), "case3 mismatch"

    print("KERNEL_OK")
</pallas_src>

<mosaic_0001>
module attributes {stable_mosaic.version = 11 : i64} {
  func.func @_wan_rope_kernel(%arg0: i32, %arg1: i32, %arg2: memref<2x2x128xf32, #tpu.memory_space<vmem>>, %arg3: memref<2x128xf32, #tpu.memory_space<vmem>>, %arg4: memref<2x2x128xf32, #tpu.memory_space<vmem>>) attributes {dimension_semantics = [#tpu.dimension_semantics<parallel>, #tpu.dimension_semantics<parallel>], iteration_bounds = array<i64: 1, 2>, scalar_prefetch = 0 : i64, scratch_operands = 0 : i64, tpu.core_type = #tpu.core_type<tc>, window_params = [{pipeline_mode = #tpu.pipeline_mode<synchronous>, transform_indices = @transform_0, window_bounds = array<i64: 2, 2, 128>}, {transform_indices = @transform_1, window_bounds = array<i64: 2, 128>}, {transform_indices = @transform_2, window_bounds = array<i64: 2, 2, 128>}]} {
    %0 = arith.index_cast %arg1 : i32 to index
    %c0 = arith.constant 0 : index
    %c0_0 = arith.constant 0 : index
    %1 = vector.load %arg2[%0, %c0, %c0_0] : memref<2x2x128xf32, #tpu.memory_space<vmem>>, vector<1x2x128xf32>
    %2 = vector.shape_cast %1 : vector<1x2x128xf32> to vector<2x128xf32>
    %c0_1 = arith.constant 0 : index
    %c0_2 = arith.constant 0 : index
    %3 = vector.load %arg3[%c0_1, %c0_2] : memref<2x128xf32, #tpu.memory_space<vmem>>, vector<2x128xf32>
    %4 = vector.shape_cast %3 : vector<2x128xf32> to vector<1x2x128xf32>
    %5 = vector.shape_cast %2 : vector<2x128xf32> to vector<2x1x128xf32>
    %6 = vector.broadcast %4 : vector<1x2x128xf32> to vector<2x2x128xf32>
    %7 = vector.broadcast %5 : vector<2x1x128xf32> to vector<2x2x128xf32>
    %8 = arith.addf %6, %7 : vector<2x2x128xf32>
    %c0_3 = arith.constant 0 : index
    %c0_4 = arith.constant 0 : index
    %c0_5 = arith.constant 0 : index
    %9 = vector.load %arg4[%c0_3, %c0_4, %c0_5] : memref<2x2x128xf32, #tpu.memory_space<vmem>>, vector<2x2x128xf32>
    tpu.vector_store %arg4[%c0_3, %c0_4, %c0_5], %8 {strides = array<i32>} : memref<2x2x128xf32, #tpu.memory_space<vmem>>, vector<2x2x128xf32>,
    return
  }
  func.func @transform_0(%arg0: i32, %arg1: i32) -> (i32, i32, i32) {
    %c0_i32 = arith.constant 0 : i32
    %c0_i32_0 = arith.constant 0 : i32
    %c0_i32_1 = arith.constant 0 : i32
    %c0_i32_2 = arith.constant 0 : i32
    return %c0_i32, %c0_i32_0, %c0_i32_1 : i32, i32, i32
  }
  func.func @transform_1(%arg0: i32, %arg1: i32) -> (i32, i32) {
    %c0_i32 = arith.constant 0 : i32
    %c0_i32_0 = arith.constant 0 : i32
    return %arg0, %c0_i32 : i32, i32
  }
  func.func @transform_2(%arg0: i32, %arg1: i32) -> (i32, i32, i32) {
    %c0_i32 = arith.constant 0 : i32
    %c0_i32_0 = arith.constant 0 : i32
    return %arg1, %arg0, %c0_i32 : i32, i32, i32
  }
}

</mosaic_0001>

<bundles_post_ra>
// kernel: tpu_custom_call.1
= control target key start
LH: loop header
LB: loop body
LE: loop exit
PB: predicated region body
PF: predicated region fallthrough
CT: control target
= control target key end

     0   :  { %7 = vsyncpa [#allocation3], 0  ;;  %s679_s0 = inlined_call_operand.hbm [shape: f32[2,2,128], index: 0, kind: input, shape index: {}]   ;;  %s680_s1 = inlined_call_operand.hbm [shape: f32[2,128], index: 1, kind: input, shape index: {}]   ;;  %s681_s2 = inlined_call_operand.hbm [shape: f32[4,2,128], index: 2, kind: output, shape index: {}]  }
   0x1   :  { %8 = vsyncpa [#allocation6], 0 }
   0x2   :  { %9 = vsyncpa [#allocation4], 0 }
   0x3   :  { %11 = vsyncpa [#allocation4 + $0x1], 0  ;;  %s558_s9 = smov 0   ;;  %s560_s10 = smov 0  }
   0x4   :  { %s562_s11 = smov 0   ;;  %s564_s12 = smov 0  }
   0x5   :  { %s566_s13 = smov 0   ;;  %s568_s14 = smov 0  }
   0x6 LB: > { %s293_s15 = sadd.s32 4294967295, %s535_s14   ;;  %s294_s16 = sadd.s32 4294967294, %s535_s14   ;;  %s535_s14 = sphi %s568_s14, %s17_s14   ;;  %s531_s13 = sphi %s566_s13, %s690_s13   ;;  %s527_s12 = sphi %s564_s12, %s689_s12   ;;  %s523_s11 = sphi %s562_s11, %s688_s11   ;;  %s519_s10 = sphi %s560_s10, %s687_s10   ;;  %s515_s9 = sphi %s558_s9, %s686_s9  }
   0x7   : > { %s26_s17 = sadd.s32 1, %s531_s13  ;;  %s85_s18 = sadd.s32 1, %s523_s11 }
   0x8   : > { %p27_p0 = scmp.ge.s32.totalorder %s26_s17, 2  ;;  %p95_p1 = scmp.ne.s32.totalorder %s523_s11, %s519_s10 }
   0x9   : > { %p96_p2 = scmp.eq.s32.totalorder %s293_s15, 1  ;;  %p101_p3 = scmp.ne.s32.totalorder %s519_s10, %s515_s9 }
   0xa   : > { %s692_s17 = smov (%p27_p0, %s26_s17), 0  ;;  %p102_p5 = scmp.eq.s32.totalorder %s294_s16, 1 }
   0xb   : > { %p598_p4 = por %p96_p2, %p95_p1  ;;  %s80_s20 = ssub.s32 %s531_s13, %s692_s17 }
   0xc   : > { %p295_p6 = scmp.ge.s32.totalorder %s535_s14, 1  ;;  %p83_p7 = scmp.eq.s32.totalorder %s80_s20, 0 }
   0xd   : > { %p605_p8 = por %p102_p5, %p101_p3  ;;  %p109_p9 = scmp.lt.s32.totalorder %s535_s14, 3 }
   0xe   : > { %s611_s22 = scalar_select %p83_p7, %s523_s11, %s85_s18  }
   0xf   : > { %p613_p10 = pnand %p295_p6, %p109_p9  ;;  %p617_p11 = scmp.eq.s32.totalorder %s293_s15, 0 }
  0x10   : > { %s120_s27 = sshll.u32 %s679_s0, 4  ;;  %s537_s28 = smov [#allocation2]   ;;  %s121_s27 = int_to_ptr.hbm [resolvable:$true] %s120_s27 }
  0x11   : > { %p319_p12 = pneg %p613_p10  ;;  %s122_s29 = sshll.u32 %s537_s28, 4  ;;  %s123_s29 = int_to_ptr.vmem [resolvable:$true] %s122_s29 }
  0x12   : > { %s137_s4 = sshll.u32 %s680_s1, 4  ;;  %s538_s5 = smov 32   ;;  %s138_s4 = int_to_ptr.hbm [resolvable:$true] %s137_s4 }
  0x13   : > { %p320_p13 = pnand %p617_p11, %p319_p12  ;;  %s539_s6 = smov 2  }
  0x14   : > { %s540_s7 = smov [#allocation5]   ;;  %152 = sbr.rel (%p613_p10) target bundleno = 46 (0x2e), region = 28 }
  0x15   : > { %322 = dma.hbm_to_vmem [thread:$0]  (!%p320_p13), %s121_s27, 64, %s123_s29, [#allocation3], %s538_s5, %s538_s5, %s539_s6  }
  0x16   : > { %s139_s8 = sshll.u32 %s540_s7, 4  ;;  %s140_s8 = int_to_ptr.vmem [resolvable:$true] %s139_s8 }
  0x17   : > { %325 = dma.hbm_to_vmem [thread:$0]  (!%p320_p13), %s138_s4, 32, %s140_s8, [#allocation6]  }
  0x19   : > { %502 = dma.done.wait (%p617_p11), [#allocation3], 64  }
  0x1a   : > { %504 = vsyncadd (%p617_p11), [#allocation3], 4294967232 }
  0x1b   : > { %506 = dma.done.wait (%p617_p11), [#allocation6], 32  }
  0x1c   : > { %508 = vsyncadd (%p617_p11), [#allocation6], 4294967264  ;;  %s172_s15 = sand.u32 1, %s519_s10   ;;  %s302_s16 = sshll.u32 %s527_s12, 1  ;;  %v179_v1 = vld [vmem:[#allocation5] sm:$0x3] }
  0x1d   : > { %s301_s18 = sshll.u32 %s172_s15, 2  ;;  %s308_s20 = sshll.u32 %s527_s12, 2 }
  0x1e   : > { %s203_s26 = scalar_lea.hbm %s681_s2, %s308_s20  ;;  %s177_s27 = scalar_lea.vmem [#allocation2], %s302_s16 }
  0x1f   : > { %v178_v0 = vld [vmem:[%s177_s27] sm:$0x3]  ;;  %s174_s28 = scalar_lea.vmem [#allocation7], %s301_s18  ;;  %s206_s24 = sshll.u32 %s203_s26, 4  ;;  %s207_s24 = int_to_ptr.hbm [resolvable:$true] %s206_s24 }
  0x20   : > { %v182_v2 = vperm.slane %v178_v0, 0  ;;  %s204_s29 = sshll.u32 %s174_s28, 4  ;;  %v181_v3 = vrot.slane %v178_v0, 1  ;;  %s191_s12 = scalar_lea.sflag [#allocation4], %s172_s15  ;;  %s205_s29 = int_to_ptr.vmem [resolvable:$true] %s204_s29 }
  0x21   : > { %s463_s30 = sshra.s32 %s207_s24, 4  ;;  %s469_s6 = scalar_lea.hbm %s681_s2, 8  ;;  %s464_s30 = int_to_ptr.hbm [resolvable:$true] %s463_s30 }
  0x22   : > { %v186_v4 = vadd.f32 %v182_v2, %v179_v1  ;;  %v183_v5 = vperm.slane %v181_v3, 0  ;;  %s465_s3 = scalar_lea.hbm %s464_s30, 4  ;;  %p470_p3 = scmp.lt.s32.totalorder %s464_s30, %s681_s2 }
  0x23   : > { %p466_p0 = scmp.ne.s32.totalorder %s464_s30, %s465_s3  ;;  %p471_p5 = scmp.lt.s32.totalorder %s469_s6, %s465_s3 }
  0x24   : > { %188 = vst [vmem:[%s174_s28] sm:$0x3] %v186_v4  ;;  %v187_v6 = vadd.f32 %v183_v5, %v179_v1 }
  0x25   : > { %p467_p1 = pnand %p466_p0, %p598_p4  ;;  %p472_p6 = por %p471_p5, %p470_p3 }
  0x26   : > { %189 = vst [vmem:[%s174_s28 + $0x2] sm:$0x3] %v187_v6 }
  0x27   : > { %p468_p2 = pneg %p467_p1 }
  0x29   : > { %p473_p7 = pnand %p472_p6, %p468_p2 }
  0x2b   : > { %476 = shalt.err (!%p473_p7)
}
  0x2c   : > { %s541_s15 = smov 32   ;;  %s542_s16 = smov 2  }
  0x2d   : > { %317 = dma.vmem_to_hbm [thread:$0]  (%p598_p4), %s205_s29, 64, %s207_s24, %s191_s12, %s541_s15, %s541_s15, %s542_s16  }
  0x2e PF: > { %p334_p9 = scmp.ge.s32.totalorder %s535_s14, 2  ;;  %s221_s18 = sand.u32 1, %s515_s9  }
  0x2f   : > { %s222_s20 = scalar_lea.sflag [#allocation4], %s221_s18 }
  0x30   : > { %p327_p10 = pnand %p334_p9, %p605_p8 }
  0x32   : > { %p328_p11 = pneg %p327_p10 }
  0x34   : > { %510 = dma.done.wait (%p328_p11), %s222_s20, 64  }
  0x35   : > { %512 = vsyncadd (%p328_p11), %s222_s20, 4294967232  ;;  %s17_s14 = sadd.s32 1, %s535_s14   ;;  %s686_s9 = smov %s519_s10 }
  0x36   : > { %p14_p12 = scmp.ge.s32.totalorder %s17_s14, 4   ;;  %s687_s10 = smov %s523_s11 }
  0x37   : > { %s688_s11 = smov %s611_s22  ;;  %s689_s12 = smov %s531_s13 }
  0x38   : > { %s690_s13 = smov %s692_s17  ;;  %16 = sbr.rel (!%p14_p12) target bundleno = 6 (0x6), region = 71 }
  0x3d   :  { %228 = vsyncpa [#allocation3], 1 }
  0x3e   :  { %230 = vsyncpa [#allocation3 + $0x1], 1 }
  0x3f   :  { %231 = vsyncpa [#allocation6], 1 }
  0x40   :  { %232 = vsyncpa [#allocation4], 1 }
  0x41   :  { %234 = vsyncpa [#allocation4 + $0x1], 1 }

</bundles_post_ra>
